<compile_context>
chip_gen: v7x
topology: tpu7x:2x2x1
jax: 0.10.0
libtpu: 0.0.40
codegen_flags: <defaults>
</compile_context>

<pallas_src>
import functools

import jax
import jax.numpy as jnp
from jax.experimental import pallas as pl
from jax.experimental.pallas import tpu as pltpu


# ----------------------------------------------------------------------------
# Fused kernel: graph pooling + sGPN score + BCE partial sum.
# Grid = (2, b); one step handles the M subgraphs of (sign s, image bi).
#   pool_ref (M,N,N)  att_ref (M,N,L)  mask_ref (M,N)
#   w1 (2L,H)  b1 (1,H)  w2 (1,H)  b2 (1,1)
#   ro_ref (M,2L)  score_ref (M,1)  lpart_ref (1,1)
# ----------------------------------------------------------------------------
def _pool_score_kernel(pool_ref, att_ref, mask_ref,
                       w1_ref, b1_ref, w2_ref, b2_ref,
                       ro_ref, score_ref, lpart_ref):
    L = att_ref.shape[-1]

    # ---- graph pooling: batched pool_mtx @ node_feats (MXU) ----
    clean = jnp.einsum('mij,mjl->mil', pool_ref[...], att_ref[...],
                       preferred_element_type=jnp.float32)          # (M, N, L)
    max_feat = jnp.max(clean, axis=1)                                # (M, L)
    mask_sum = jnp.sum(mask_ref[...], axis=1, keepdims=True)         # (M, 1)
    # guard empty masks; reciprocal runs on the EUP slot (cheap)
    inv = pl.reciprocal(jnp.maximum(mask_sum, 1.0), approx=True)
    mean_feat = jnp.sum(clean, axis=1) * inv                         # (M, L)

    # two slice stores instead of a lane-axis concatenate
    ro_ref[:, :L] = max_feat
    ro_ref[:, L:] = mean_feat

    # ---- fused sGPN head: Linear -> ReLU -> [Dropout==id] -> Linear -> sigmoid ----
    # split the first matmul so no concatenated (M, 2L) value is materialized
    w1 = w1_ref[...]
    h = (jnp.dot(max_feat, w1[:L, :], preferred_element_type=jnp.float32)
         + jnp.dot(mean_feat, w1[L:, :], preferred_element_type=jnp.float32)
         + b1_ref[...])                                              # (M, H)
    h = jnp.maximum(h, 0.0)
    # TODO(synk): Dropout(0.5) is identity here (eval-mode semantics).
    # hid -> 1 linear as a VPU broadcast-multiply + cross-lane sum (skip MXU)
    z = jnp.sum(h * w2_ref[...], axis=-1, keepdims=True) + b2_ref[...]   # (M, 1)
    p = jax.nn.sigmoid(z)
    score_ref[...] = p

    # ---- per-step BCE partial sum; target = 1 for pos half (s==0), else 0 ----
    t = jnp.where(pl.program_id(0) == 0, 1.0, 0.0)
    log_p = jnp.maximum(jnp.log(p), -100.0)          # PyTorch BCELoss log clamp
    log_1mp = jnp.maximum(jnp.log(1.0 - p), -100.0)
    lpart_ref[...] = jnp.sum(-(t * log_p + (1.0 - t) * log_1mp), keepdims=True)


def gpn_pool_and_score(gpn_pool_mtx, gpn_att, att_masks, w1, b1, w2, b2):
    b, _, M, N, _ = gpn_pool_mtx.shape
    L = gpn_att.shape[-1]
    hid = w1.shape[-1]
    return pl.pallas_call(
        _pool_score_kernel,
        out_shape=(
            jax.ShapeDtypeStruct((2, b, M, 2 * L), jnp.float32),   # read_out
            jax.ShapeDtypeStruct((2, b, M, 1), jnp.float32),       # scores
            jax.ShapeDtypeStruct((2, b, 1, 1), jnp.float32),       # BCE partials
        ),
        grid=(2, b),
        in_specs=[
            # native layouts, no wrapper transposes
            pl.BlockSpec((None, None, M, N, N), lambda s, bi: (bi, s, 0, 0, 0)),
            pl.BlockSpec((None, None, M, N, L), lambda s, bi: (s, bi, 0, 0, 0)),
            pl.BlockSpec((None, None, M, N), lambda s, bi: (bi, s, 0, 0)),
            # weights: same block every step (stay resident)
            pl.BlockSpec((2 * L, hid), lambda s, bi: (0, 0)),
            pl.BlockSpec((1, hid), lambda s, bi: (0, 0)),
            pl.BlockSpec((1, hid), lambda s, bi: (0, 0)),
            pl.BlockSpec((1, 1), lambda s, bi: (0, 0)),
        ],
        out_specs=(
            pl.BlockSpec((None, None, M, 2 * L), lambda s, bi: (s, bi, 0, 0)),
            pl.BlockSpec((None, None, M, 1), lambda s, bi: (s, bi, 0, 0)),
            pl.BlockSpec((None, None, 1, 1), lambda s, bi: (s, bi, 0, 0)),
        ),
        compiler_params=pltpu.CompilerParams(
            dimension_semantics=("parallel", "parallel")),
    )(gpn_pool_mtx, gpn_att, att_masks, w1, b1, w2, b2)


# ----------------------------------------------------------------------------
# read_out_proj (Linear -> Linear).  Whole-array blocks, single launch.
# ----------------------------------------------------------------------------
def _proj_kernel(x_ref, w1_ref, b1_ref, w2_ref, b2_ref, out_ref):
    h = jnp.dot(x_ref[...], w1_ref[...],
                preferred_element_type=jnp.float32) + b1_ref[...]
    out_ref[...] = jnp.dot(h, w2_ref[...],
                           preferred_element_type=jnp.float32) + b2_ref[...]


def read_out_proj(x, w1, b1, w2, b2):
    b, twoL = x.shape
    return pl.pallas_call(
        _proj_kernel,
        out_shape=jax.ShapeDtypeStruct((b, twoL), jnp.float32),
    )(x, w1, b1, w2, b2)


# ----------------------------------------------------------------------------
# Full forward (test_LSTM=False, use_sGPN_score=True)
# ----------------------------------------------------------------------------
@functools.partial(jax.jit, static_argnums=(1, 2, 3, 4))
def gpn_forward(params, b, N, K, L, gpn_obj_ind, gpn_pred_ind, gpn_nrel_ind,
                gpn_pool_mtx, att_feats, x_pred, fc_feats, att_masks):
    M = gpn_obj_ind.shape[2]
    G = 2 * b * M

    # ---- extract_subgraph_feats: node gathers (plain-JAX glue) ----
    batch_idx = jnp.arange(b)[:, None, None]
    pos_gpn_att = att_feats[batch_idx, gpn_obj_ind[:, 0]]        # (b, M, N, L)
    neg_gpn_att = att_feats[batch_idx, gpn_obj_ind[:, 1]]        # (b, M, N, L)
    gpn_att = jnp.stack([pos_gpn_att, neg_gpn_att], axis=0)      # (2, b, M, N, L)
    # NOTE: the edge-feature gather (gpn_pred) of the reference is dead on this
    # path and is omitted (it is never consumed).

    # ---- fused pooling + sGPN score + BCE partials (Pallas) ----
    read_out, scores, loss_parts = gpn_pool_and_score(
        gpn_pool_mtx, gpn_att, att_masks,
        params["fc_w1"], params["fc_b1"], params["fc_w2"], params["fc_b2"])

    subgraph_score = scores.reshape(G, 1)                        # (G, 1)
    gpn_loss = jnp.sum(loss_parts) / G                           # mean over G

    # ---- pick best positive subgraph per image (glue) ----
    gpn_score = scores[0, :, :, 0]                               # (b, M)
    gpn_ind = jnp.argmax(gpn_score, axis=-1)                     # (b,)
    batch_r = jnp.arange(b)
    pos_obj_ind = gpn_obj_ind[:, 0]                              # (b, M, N)
    subgraph_obj_ind = pos_obj_ind[batch_r, gpn_ind]             # (b, N)
    att_feats_out = att_feats[batch_r[:, None], subgraph_obj_ind]  # (b, N, L)
    att_masks_out = att_masks[:, 0][batch_r, gpn_ind]            # (b, N)
    sub_read_out = read_out[0][batch_r, gpn_ind]                 # (b, 2L)

    # ---- read_out_proj (Pallas) ----
    fc_feats_out = read_out_proj(sub_read_out, params["proj_w1"], params["proj_b1"],
                                 params["proj_w2"], params["proj_b2"])   # (b, 2L)

    return gpn_loss, subgraph_score, att_feats_out, fc_feats_out, att_masks_out


# ----------------------------------------------------------------------------
# Pure-JAX reference of score/loss for a loose numeric sanity check.
# ----------------------------------------------------------------------------
def _reference_score_loss(params, b, N, L, gpn_obj_ind, gpn_pool_mtx,
                          att_feats, att_masks):
    M = gpn_obj_ind.shape[2]
    batch_idx = jnp.arange(b)[:, None, None]
    pos = att_feats[batch_idx, gpn_obj_ind[:, 0]].reshape(b * M, N, L)
    neg = att_feats[batch_idx, gpn_obj_ind[:, 1]].reshape(b * M, N, L)
    gpn_att = jnp.concatenate([pos, neg], axis=0)                         # (G,N,L)
    each_pool = jnp.transpose(gpn_pool_mtx, (1, 0, 2, 3, 4)).reshape(-1, N, N)
    clean = jnp.einsum('gij,gjl->gil', each_pool, gpn_att)
    max_feat = jnp.max(clean, axis=1)
    msum = jnp.transpose(att_masks, (1, 0, 2, 3)).reshape(-1, N).sum(-1, keepdims=True)
    mean_feat = jnp.sum(clean, axis=1) / msum
    read_out = jnp.concatenate([max_feat, mean_feat], axis=-1)
    h = jnp.maximum(read_out @ params["fc_w1"] + params["fc_b1"], 0.0)
    z = h @ params["fc_w2"].T + params["fc_b2"]
    p = jax.nn.sigmoid(z)
    G = p.shape[0]
    t = (jnp.arange(G)[:, None] < G // 2).astype(jnp.float32)
    loss = -jnp.mean(t * jnp.maximum(jnp.log(p), -100.0)
                     + (1.0 - t) * jnp.maximum(jnp.log(1.0 - p), -100.0))
    return p, loss


# ----------------------------------------------------------------------------
# Deterministic parameter init (nn.Linear-style; stored as (in, out) except the
# hid->1 head which is stored as a (1, hid) row; biases zero as in __init__).
# ----------------------------------------------------------------------------
def init_params(key, L, hid):
    k1, k2, k3, k4 = jax.random.split(key, 4)
    scale = 0.02
    return {
        "fc_w1": scale * jax.random.normal(k1, (2 * L, hid), jnp.float32),
        "fc_b1": jnp.zeros((1, hid), jnp.float32),
        "fc_w2": scale * jax.random.normal(k2, (1, hid), jnp.float32),
        "fc_b2": jnp.zeros((1, 1), jnp.float32),
        "proj_w1": scale * jax.random.normal(k3, (2 * L, hid), jnp.float32),
        "proj_b1": jnp.zeros((1, hid), jnp.float32),
        "proj_w2": scale * jax.random.normal(k4, (hid, 2 * L), jnp.float32),
        "proj_b2": jnp.zeros((1, 2 * L), jnp.float32),
    }


if __name__ == "__main__":
    # small, self-consistent shapes
    b, N, K, L = 2, 8, 6, 32         # L plays the role of GCN_dim
    hid = 16
    M = 3                            # subgraphs per image
    num_objs, num_preds = 10, 12

    key = jax.random.PRNGKey(0)
    keys = jax.random.split(key, 8)

    params = init_params(keys[0], L, hid)

    gpn_obj_ind = jax.random.randint(keys[1], (b, 2, M, N), 0, num_objs, jnp.int32)
    gpn_pred_ind = jax.random.randint(keys[2], (b, 2, M, K), 0, num_preds, jnp.int32)
    gpn_nrel_ind = jax.random.randint(keys[3], (b, 2, M, K, 2), 0, N, jnp.int32)  # unused
    gpn_pool_mtx = jax.random.uniform(keys[4], (b, 2, M, N, N), jnp.float32)
    att_feats = jax.random.normal(keys[5], (b, num_objs, L), jnp.float32)
    x_pred = jax.random.normal(keys[6], (b, num_preds, L), jnp.float32)
    fc_feats = jnp.zeros((b, 2 * L), jnp.float32)   # unused in this path
    att_masks = (jax.random.uniform(keys[7], (b, 2, M, N)) > 0.3).astype(jnp.float32)
    att_masks = att_masks.at[..., 0].set(1.0)       # ensure every subgraph is non-empty

    out = gpn_forward(params, b, N, K, L, gpn_obj_ind, gpn_pred_ind, gpn_nrel_ind,
                      gpn_pool_mtx, att_feats, x_pred, fc_feats, att_masks)
    out = jax.block_until_ready(out)

    gpn_loss, subgraph_score, att_feats_o, fc_feats_o, att_masks_o = out
    assert subgraph_score.shape == (2 * b * M, 1)
    assert att_feats_o.shape == (b, N, L)
    assert fc_feats_o.shape == (b, 2 * L)
    assert att_masks_o.shape == (b, N)

    # loose numeric sanity check (kernel uses an approximate EUP reciprocal)
    ref_score, ref_loss = _reference_score_loss(params, b, N, L, gpn_obj_ind,
                                                gpn_pool_mtx, att_feats, att_masks)
    assert float(jnp.max(jnp.abs(subgraph_score - ref_score))) < 1e-2
    assert float(jnp.abs(gpn_loss - ref_loss)) < 1e-2

    print("KERNEL_OK")
</pallas_src>

<mosaic_0001>
module attributes {stable_mosaic.version = 11 : i64} {
  func.func @_pool_score_kernel(%arg0: i32, %arg1: i32, %arg2: memref<1x1x3x8x8xf32, #tpu.memory_space<vmem>>, %arg3: memref<1x1x3x8x32xf32, #tpu.memory_space<vmem>>, %arg4: memref<1x1x3x8xf32, #tpu.memory_space<vmem>>, %arg5: memref<64x16xf32, #tpu.memory_space<vmem>>, %arg6: memref<1x16xf32, #tpu.memory_space<vmem>>, %arg7: memref<1x16xf32, #tpu.memory_space<vmem>>, %arg8: memref<1x1xf32, #tpu.memory_space<vmem>>, %arg9: memref<1x1x3x64xf32, #tpu.memory_space<vmem>>, %arg10: memref<1x1x3x1xf32, #tpu.memory_space<vmem>>, %arg11: memref<1x1x1x1xf32, #tpu.memory_space<vmem>>) attributes {dimension_semantics = [#tpu.dimension_semantics<parallel>, #tpu.dimension_semantics<parallel>], iteration_bounds = array<i64: 2, 2>, scalar_prefetch = 0 : i64, scratch_operands = 0 : i64, tpu.core_type = #tpu.core_type<tc>, window_params = [{transform_indices = @transform_0, window_bounds = array<i64: 1, 1, 3, 8, 8>}, {transform_indices = @transform_1, window_bounds = array<i64: 1, 1, 3, 8, 32>}, {transform_indices = @transform_2, window_bounds = array<i64: 1, 1, 3, 8>}, {pipeline_mode = #tpu.pipeline_mode<synchronous>, transform_indices = @transform_3, window_bounds = array<i64: 64, 16>}, {pipeline_mode = #tpu.pipeline_mode<synchronous>, transform_indices = @transform_4, window_bounds = array<i64: 1, 16>}, {pipeline_mode = #tpu.pipeline_mode<synchronous>, transform_indices = @transform_5, window_bounds = array<i64: 1, 16>}, {pipeline_mode = #tpu.pipeline_mode<synchronous>, transform_indices = @transform_6, window_bounds = array<i64: 1, 1>}, {transform_indices = @transform_7, window_bounds = array<i64: 1, 1, 3, 64>}, {transform_indices = @transform_8, window_bounds = array<i64: 1, 1, 3, 1>}, {transform_indices = @transform_9, window_bounds = array<i64: 1, 1, 1, 1>}]} {
    %c0 = arith.constant 0 : index
    %c0_0 = arith.constant 0 : index
    %c0_1 = arith.constant 0 : index
    %c0_2 = arith.constant 0 : index
    %c0_3 = arith.constant 0 : index
    %0 = vector.load %arg2[%c0, %c0_0, %c0_1, %c0_2, %c0_3] : memref<1x1x3x8x8xf32, #tpu.memory_space<vmem>>, vector<1x1x3x8x8xf32>
    %1 = vector.shape_cast %0 : vector<1x1x3x8x8xf32> to vector<3x8x8xf32>
    %c0_4 = arith.constant 0 : index
    %c0_5 = arith.constant 0 : index
    %c0_6 = arith.constant 0 : index
    %c0_7 = arith.constant 0 : index
    %c0_8 = arith.constant 0 : index
    %2 = vector.load %arg3[%c0_4, %c0_5, %c0_6, %c0_7, %c0_8] : memref<1x1x3x8x32xf32, #tpu.memory_space<vmem>>, vector<1x1x3x8x32xf32>
    %3 = vector.shape_cast %2 : vector<1x1x3x8x32xf32> to vector<3x8x32xf32>
    "tpu.trace_start"() <{level = 10 : i32, message = "mij,mjl->mil"}> : () -> ()
    %cst = arith.constant dense<0.000000e+00> : vector<3x8x32xf32>
    %4 = tpu.matmul %1, %3, %cst {dimension_numbers = #tpu.dot_dimension_numbers<[2], [1], [1], [2], [0, 0, 0, 1, 1, 2], [0], [0]>} : vector<3x8x8xf32>, vector<3x8x32xf32>, vector<3x8x32xf32> -> vector<3x8x32xf32>
    "tpu.trace_stop"() : () -> ()
    %cst_9 = arith.constant dense<0xFF800000> : vector<3x32xf32>
    %5 = vector.multi_reduction <maximumf>, %4, %cst_9 [1] : vector<3x8x32xf32> to vector<3x32xf32>
    %c0_10 = arith.constant 0 : index
    %c0_11 = arith.constant 0 : index
    %c0_12 = arith.constant 0 : index
    %c0_13 = arith.constant 0 : index
    %6 = vector.load %arg4[%c0_10, %c0_11, %c0_12, %c0_13] : memref<1x1x3x8xf32, #tpu.memory_space<vmem>>, vector<1x1x3x8xf32>
    %7 = vector.shape_cast %6 : vector<1x1x3x8xf32> to vector<3x8xf32>
    %cst_14 = arith.constant dense<0.000000e+00> : vector<3xf32>
    %8 = vector.multi_reduction <add>, %7, %cst_14 [1] : vector<3x8xf32> to vector<3xf32>
    %9 = vector.shape_cast %8 : vector<3xf32> to vector<3x1xf32>
    %cst_15 = arith.constant 1.000000e+00 : f32
    %10 = vector.broadcast %cst_15 : f32 to vector<3x1xf32>
    %11 = arith.maximumf %9, %10 : vector<3x1xf32>
    %12 = tpu.reciprocal %11 {approx = true} : vector<3x1xf32> -> vector<3x1xf32>
    %cst_16 = arith.constant dense<0.000000e+00> : vector<3x32xf32>
    %13 = vector.multi_reduction <add>, %4, %cst_16 [1] : vector<3x8x32xf32> to vector<3x32xf32>
    %14 = vector.broadcast %12 : vector<3x1xf32> to vector<3x32xf32>
    %15 = arith.mulf %13, %14 : vector<3x32xf32>
    %c0_17 = arith.constant 0 : index
    %c0_18 = arith.constant 0 : index
    %c0_19 = arith.constant 0 : index
    %c0_20 = arith.constant 0 : index
    %16 = vector.load %arg9[%c0_17, %c0_18, %c0_19, %c0_20] : memref<1x1x3x64xf32, #tpu.memory_space<vmem>>, vector<1x1x3x32xf32>
    %17 = vector.shape_cast %16 : vector<1x1x3x32xf32> to vector<3x32xf32>
    %18 = vector.shape_cast %5 : vector<3x32xf32> to vector<1x1x3x32xf32>
    tpu.vector_store %arg9[%c0_17, %c0_18, %c0_19, %c0_20], %18 {strides = array<i32>} : memref<1x1x3x64xf32, #tpu.memory_space<vmem>>, vector<1x1x3x32xf32>,
    %c0_21 = arith.constant 0 : index
    %c0_22 = arith.constant 0 : index
    %c0_23 = arith.constant 0 : index
    %c32 = arith.constant 32 : index
    %19 = vector.load %arg9[%c0_21, %c0_22, %c0_23, %c32] : memref<1x1x3x64xf32, #tpu.memory_space<vmem>>, vector<1x1x3x32xf32>
    %20 = vector.shape_cast %19 : vector<1x1x3x32xf32> to vector<3x32xf32>
    %21 = vector.shape_cast %15 : vector<3x32xf32> to vector<1x1x3x32xf32>
    tpu.vector_store %arg9[%c0_21, %c0_22, %c0_23, %c32], %21 {strides = array<i32>} : memref<1x1x3x64xf32, #tpu.memory_space<vmem>>, vector<1x1x3x32xf32>,
    %c0_24 = arith.constant 0 : index
    %c0_25 = arith.constant 0 : index
    %22 = vector.load %arg5[%c0_24, %c0_25] : memref<64x16xf32, #tpu.memory_space<vmem>>, vector<64x16xf32>
    %23 = vector.extract_strided_slice %22 {offsets = [0, 0], sizes = [32, 16], strides = [1, 1]} : vector<64x16xf32> to vector<32x16xf32>
    %cst_26 = arith.constant dense<0.000000e+00> : vector<3x16xf32>
    %24 = tpu.matmul %5, %23, %cst_26 {dimension_numbers = #tpu.dot_dimension_numbers<[1], [0], [0], [1], [0, 0, 1, 1], [], []>} : vector<3x32xf32>, vector<32x16xf32>, vector<3x16xf32> -> vector<3x16xf32>
    %25 = vector.extract_strided_slice %22 {offsets = [32, 0], sizes = [32, 16], strides = [1, 1]} : vector<64x16xf32> to vector<32x16xf32>
    %cst_27 = arith.constant dense<0.000000e+00> : vector<3x16xf32>
    %26 = tpu.matmul %15, %25, %cst_27 {dimension_numbers = #tpu.dot_dimension_numbers<[1], [0], [0], [1], [0, 0, 1, 1], [], []>} : vector<3x32xf32>, vector<32x16xf32>, vector<3x16xf32> -> vector<3x16xf32>
    %27 = arith.addf %24, %26 : vector<3x16xf32>
    %c0_28 = arith.constant 0 : index
    %c0_29 = arith.constant 0 : index
    %28 = vector.load %arg6[%c0_28, %c0_29] : memref<1x16xf32, #tpu.memory_space<vmem>>, vector<1x16xf32>
    %29 = vector.broadcast %28 : vector<1x16xf32> to vector<3x16xf32>
    %30 = arith.addf %27, %29 : vector<3x16xf32>
    %cst_30 = arith.constant 0.000000e+00 : f32
    %31 = vector.broadcast %cst_30 : f32 to vector<3x16xf32>
    %32 = arith.maximumf %30, %31 : vector<3x16xf32>
    %c0_31 = arith.constant 0 : index
    %c0_32 = arith.constant 0 : index
    %33 = vector.load %arg7[%c0_31, %c0_32] : memref<1x16xf32, #tpu.memory_space<vmem>>, vector<1x16xf32>
    %34 = vector.broadcast %33 : vector<1x16xf32> to vector<3x16xf32>
    %35 = arith.mulf %32, %34 : vector<3x16xf32>
    %cst_33 = arith.constant dense<0.000000e+00> : vector<3xf32>
    %36 = vector.multi_reduction <add>, %35, %cst_33 [1] : vector<3x16xf32> to vector<3xf32>
    %37 = vector.shape_cast %36 : vector<3xf32> to vector<3x1xf32>
    %c0_34 = arith.constant 0 : index
    %c0_35 = arith.constant 0 : index
    %38 = vector.load %arg8[%c0_34, %c0_35] : memref<1x1xf32, #tpu.memory_space<vmem>>, vector<1x1xf32>
    %39 = vector.broadcast %38 : vector<1x1xf32> to vector<3x1xf32>
    %40 = arith.addf %37, %39 : vector<3x1xf32>
    %41 = arith.negf %40 : vector<3x1xf32>
    %42 = math.exp %41 : vector<3x1xf32>
    %cst_36 = arith.constant 1.000000e+00 : f32
    %43 = vector.broadcast %cst_36 : f32 to vector<3x1xf32>
    %44 = arith.addf %43, %42 : vector<3x1xf32>
    %45 = arith.divf %43, %44 : vector<3x1xf32>
    %c0_37 = arith.constant 0 : index
    %c0_38 = arith.constant 0 : index
    %c0_39 = arith.constant 0 : index
    %c0_40 = arith.constant 0 : index
    %46 = vector.load %arg10[%c0_37, %c0_38, %c0_39, %c0_40] : memref<1x1x3x1xf32, #tpu.memory_space<vmem>>, vector<1x1x3x1xf32>
    %47 = vector.shape_cast %46 : vector<1x1x3x1xf32> to vector<3x1xf32>
    %48 = vector.shape_cast %45 : vector<3x1xf32> to vector<1x1x3x1xf32>
    tpu.vector_store %arg10[%c0_37, %c0_38, %c0_39, %c0_40], %48 {strides = array<i32>} : memref<1x1x3x1xf32, #tpu.memory_space<vmem>>, vector<1x1x3x1xf32>,
    %c0_i32 = arith.constant 0 : i32
    %49 = arith.cmpi eq, %arg0, %c0_i32 : i32
    %cst_41 = arith.constant 1.000000e+00 : f32
    %cst_42 = arith.constant 0.000000e+00 : f32
    %50 = arith.select %49, %cst_41, %cst_42 : f32
    %51 = math.log %45 : vector<3x1xf32>
    %cst_43 = arith.constant -1.000000e+02 : f32
    %52 = vector.broadcast %cst_43 : f32 to vector<3x1xf32>
    %53 = arith.maximumf %51, %52 : vector<3x1xf32>
    %cst_44 = arith.constant 1.000000e+00 : f32
    %54 = vector.broadcast %cst_44 : f32 to vector<3x1xf32>
    %55 = arith.subf %54, %45 : vector<3x1xf32>
    %56 = math.log %55 : vector<3x1xf32>
    %cst_45 = arith.constant -1.000000e+02 : f32
    %57 = vector.broadcast %cst_45 : f32 to vector<3x1xf32>
    %58 = arith.maximumf %56, %57 : vector<3x1xf32>
    %59 = vector.broadcast %50 : f32 to vector<3x1xf32>
    %60 = arith.mulf %59, %53 : vector<3x1xf32>
    %cst_46 = arith.constant 1.000000e+00 : f32
    %61 = arith.subf %cst_46, %50 : f32
    %62 = vector.broadcast %61 : f32 to vector<3x1xf32>
    %63 = arith.mulf %62, %58 : vector<3x1xf32>
    %64 = arith.addf %60, %63 : vector<3x1xf32>
    %cst_47 = arith.constant 0.000000e+00 : f32
    %65 = vector.broadcast %cst_47 : f32 to vector<3x1xf32>
    %66 = arith.subf %65, %64 : vector<3x1xf32>
    %67 = vector.shape_cast %66 : vector<3x1xf32> to vector<1x3x1xf32>
    %cst_48 = arith.constant dense<0.000000e+00> : vector<1xf32>
    %68 = vector.multi_reduction <add>, %67, %cst_48 [1, 2] : vector<1x3x1xf32> to vector<1xf32>
    %69 = vector.shape_cast %68 : vector<1xf32> to vector<1x1x1xf32>
    %70 = vector.extract %69[0, 0, 0] : f32 from vector<1x1x1xf32>
    %71 = vector.broadcast %70 : f32 to vector<1x1xf32>
    %c0_49 = arith.constant 0 : index
    %c0_50 = arith.constant 0 : index
    %c0_51 = arith.constant 0 : index
    %c0_52 = arith.constant 0 : index
    %72 = vector.load %arg11[%c0_49, %c0_50, %c0_51, %c0_52] : memref<1x1x1x1xf32, #tpu.memory_space<vmem>>, vector<1x1x1x1xf32>
    %73 = vector.shape_cast %72 : vector<1x1x1x1xf32> to vector<1x1xf32>
    %74 = vector.shape_cast %71 : vector<1x1xf32> to vector<1x1x1x1xf32>
    tpu.vector_store %arg11[%c0_49, %c0_50, %c0_51, %c0_52], %74 {strides = array<i32>} : memref<1x1x1x1xf32, #tpu.memory_space<vmem>>, vector<1x1x1x1xf32>,
    return
  }
  func.func @transform_0(%arg0: i32, %arg1: i32) -> (i32, i32, i32, i32, i32) {
    %c0_i32 = arith.constant 0 : i32
    %c0_i32_0 = arith.constant 0 : i32
    %c0_i32_1 = arith.constant 0 : i32
    %c0_i32_2 = arith.constant 0 : i32
    return %arg1, %arg0, %c0_i32, %c0_i32_0, %c0_i32_1 : i32, i32, i32, i32, i32
  }
  func.func @transform_1(%arg0: i32, %arg1: i32) -> (i32, i32, i32, i32, i32) {
    %c0_i32 = arith.constant 0 : i32
    %c0_i32_0 = arith.constant 0 : i32
    %c0_i32_1 = arith.constant 0 : i32
    %c0_i32_2 = arith.constant 0 : i32
    return %arg0, %arg1, %c0_i32, %c0_i32_0, %c0_i32_1 : i32, i32, i32, i32, i32
  }
  func.func @transform_2(%arg0: i32, %arg1: i32) -> (i32, i32, i32, i32) {
    %c0_i32 = arith.constant 0 : i32
    %c0_i32_0 = arith.constant 0 : i32
    %c0_i32_1 = arith.constant 0 : i32
    return %arg1, %arg0, %c0_i32, %c0_i32_0 : i32, i32, i32, i32
  }
  func.func @transform_3(%arg0: i32, %arg1: i32) -> (i32, i32) {
    %c0_i32 = arith.constant 0 : i32
    %c0_i32_0 = arith.constant 0 : i32
    %c0_i32_1 = arith.constant 0 : i32
    return %c0_i32, %c0_i32_0 : i32, i32
  }
  func.func @transform_4(%arg0: i32, %arg1: i32) -> (i32, i32) {
    %c0_i32 = arith.constant 0 : i32
    %c0_i32_0 = arith.constant 0 : i32
    %c0_i32_1 = arith.constant 0 : i32
    return %c0_i32, %c0_i32_0 : i32, i32
  }
  func.func @transform_5(%arg0: i32, %arg1: i32) -> (i32, i32) {
    %c0_i32 = arith.constant 0 : i32
    %c0_i32_0 = arith.constant 0 : i32
    %c0_i32_1 = arith.constant 0 : i32
    return %c0_i32, %c0_i32_0 : i32, i32
  }
  func.func @transform_6(%arg0: i32, %arg1: i32) -> (i32, i32) {
    %c0_i32 = arith.constant 0 : i32
    %c0_i32_0 = arith.constant 0 : i32
    %c0_i32_1 = arith.constant 0 : i32
    return %c0_i32, %c0_i32_0 : i32, i32
  }
  func.func @transform_7(%arg0: i32, %arg1: i32) -> (i32, i32, i32, i32) {
    %c0_i32 = arith.constant 0 : i32
    %c0_i32_0 = arith.constant 0 : i32
    %c0_i32_1 = arith.constant 0 : i32
    return %arg0, %arg1, %c0_i32, %c0_i32_0 : i32, i32, i32, i32
  }
  func.func @transform_8(%arg0: i32, %arg1: i32) -> (i32, i32, i32, i32) {
    %c0_i32 = arith.constant 0 : i32
    %c0_i32_0 = arith.constant 0 : i32
    %c0_i32_1 = arith.constant 0 : i32
    return %arg0, %arg1, %c0_i32, %c0_i32_0 : i32, i32, i32, i32
  }
  func.func @transform_9(%arg0: i32, %arg1: i32) -> (i32, i32, i32, i32) {
    %c0_i32 = arith.constant 0 : i32
    %c0_i32_0 = arith.constant 0 : i32
    %c0_i32_1 = arith.constant 0 : i32
    return %arg0, %arg1, %c0_i32, %c0_i32_0 : i32, i32, i32, i32
  }
}

module attributes {stable_mosaic.version = 11 : i64} {
  func.func @_proj_kernel(%arg0: memref<2x64xf32, #tpu.memory_space<vmem>>, %arg1: memref<64x16xf32, #tpu.memory_space<vmem>>, %arg2: memref<1x16xf32, #tpu.memory_space<vmem>>, %arg3: memref<16x64xf32, #tpu.memory_space<vmem>>, %arg4: memref<1x64xf32, #tpu.memory_space<vmem>>, %arg5: memref<2x64xf32, #tpu.memory_space<vmem>>) attributes {dimension_semantics = [], scalar_prefetch = 0 : i64, scratch_operands = 0 : i64, tpu.core_type = #tpu.core_type<tc>} {
    %c0 = arith.constant 0 : index
    %c0_0 = arith.constant 0 : index
    %0 = vector.load %arg0[%c0, %c0_0] : memref<2x64xf32, #tpu.memory_space<vmem>>, vector<2x64xf32>
    %c0_1 = arith.constant 0 : index
    %c0_2 = arith.constant 0 : index
    %1 = vector.load %arg1[%c0_1, %c0_2] : memref<64x16xf32, #tpu.memory_space<vmem>>, vector<64x16xf32>
    %cst = arith.constant dense<0.000000e+00> : vector<2x16xf32>
    %2 = tpu.matmul %0, %1, %cst {dimension_numbers = #tpu.dot_dimension_numbers<[1], [0], [0], [1], [0, 0, 1, 1], [], []>} : vector<2x64xf32>, vector<64x16xf32>, vector<2x16xf32> -> vector<2x16xf32>
    %c0_3 = arith.constant 0 : index
    %c0_4 = arith.constant 0 : index
    %3 = vector.load %arg2[%c0_3, %c0_4] : memref<1x16xf32, #tpu.memory_space<vmem>>, vector<1x16xf32>
    %4 = vector.broadcast %3 : vector<1x16xf32> to vector<2x16xf32>
    %5 = arith.addf %2, %4 : vector<2x16xf32>
    %c0_5 = arith.constant 0 : index
    %c0_6 = arith.constant 0 : index
    %6 = vector.load %arg3[%c0_5, %c0_6] : memref<16x64xf32, #tpu.memory_space<vmem>>, vector<16x64xf32>
    %cst_7 = arith.constant dense<0.000000e+00> : vector<2x64xf32>
    %7 = tpu.matmul %5, %6, %cst_7 {dimension_numbers = #tpu.dot_dimension_numbers<[1], [0], [0], [1], [0, 0, 1, 1], [], []>} : vector<2x16xf32>, vector<16x64xf32>, vector<2x64xf32> -> vector<2x64xf32>
    %c0_8 = arith.constant 0 : index
    %c0_9 = arith.constant 0 : index
    %8 = vector.load %arg4[%c0_8, %c0_9] : memref<1x64xf32, #tpu.memory_space<vmem>>, vector<1x64xf32>
    %9 = vector.broadcast %8 : vector<1x64xf32> to vector<2x64xf32>
    %10 = arith.addf %7, %9 : vector<2x64xf32>
    %c0_10 = arith.constant 0 : index
    %c0_11 = arith.constant 0 : index
    %11 = vector.load %arg5[%c0_10, %c0_11] : memref<2x64xf32, #tpu.memory_space<vmem>>, vector<2x64xf32>
    tpu.vector_store %arg5[%c0_10, %c0_11], %10 {strides = array<i32>} : memref<2x64xf32, #tpu.memory_space<vmem>>, vector<2x64xf32>,
    return
  }
}

</mosaic_0001>

<bundles_post_ra>
// kernel: gpn_forward.3
= control target key start
LH: loop header
LB: loop body
LE: loop exit
PB: predicated region body
PF: predicated region fallthrough
CT: control target
= control target key end

     0   :  { %v295_v3 = vmov 0.0|0.0   ;;  %vm296_vm0 = vmmov 0   ;;  %v297_v6 = vmov 0.0   ;;  %s380_s0 = inlined_call_operand.vmem [shape: f32[2,64], index: 0, kind: input, shape index: {}]   ;;  %s381_s1 = inlined_call_operand.vmem [shape: f32[64,16], index: 1, kind: input, shape index: {}]   ;;  %s382_s2 = inlined_call_operand.vmem [shape: f32[1,16], index: 2, kind: input, shape index: {}]   ;;  %s383_s3 = inlined_call_operand.vmem [shape: f32[16,64], index: 3, kind: input, shape index: {}]   ;;  %s384_s4 = inlined_call_operand.vmem [shape: f32[1,64], index: 4, kind: input, shape index: {}]   ;;  %s385_s5 = inlined_call_operand.hbm [shape: f32[2,64], index: 5, kind: output, shape index: {}]  }
   0x1   :  { %v22_v0 = vld [vmem:[%s381_s1] sm:$0xff]  ;;  %v23_v1 = vld [vmem:[%s381_s1 + $0x8] sm:$0xff]  ;;  %v24_v2 = vld [vmem:[%s381_s1 + $0x10] sm:$0xff]  ;;  %252 = vmatprep.subr.bf16.mxu0 %v295_v3  ;;  %242 = vmatprep.mubr.msk.f32.mxu0 %vm296_vm0, %v297_v6 }
   0x2   :  { %v253_v4 = vpack.c.bf16 %v23_v1, %v22_v0  ;;  %v25_v5 = vld [vmem:[%s381_s1 + $0x18] sm:$0xff]  ;;  %264 = vmatprep.subr.bf16.mxu1 %v295_v3  ;;  %249 = vmatprep.mubr.msk.f32.mxu1 %vm296_vm0, %v297_v6 }
   0x3   :  { %v256_v7 = vpack.c.bf16 %v25_v5, %v24_v2 }
   0x4   :  { %254 = vmatpush3.bf16.msra.mxu0 %v253_v4 }
   0x5   :  { %10 = vsyncpa [#allocation3], 0  ;;  %255 = vmatprep.subr.bf16.mxu0 %v295_v3  ;;  %v26_v8 = vld [vmem:[%s381_s1 + $0x20] sm:$0xff]  ;;  %v27_v9 = vld [vmem:[%s381_s1 + $0x28] sm:$0xff]  ;;  %vm37_vm1 = vcmask 523264   ;;  %vm120_vm2 = vcmask 130048  }
   0x6   :  { %v259_v10 = vpack.c.bf16 %v27_v9, %v26_v8  ;;  %v28_v11 = vld [vmem:[%s381_s1 + $0x30] sm:$0xff]  ;;  %v29_v12 = vld [vmem:[%s381_s1 + $0x38] sm:$0xff]  ;;  %v21_v14 = vld [vmem:[%s380_s0] sm:$0x3]  ;;  %s298_s17 = smov [#allocation2]   ;;  %vm194_vm3 = vcmask 517120  }
   0x7   :  { %v262_v13 = vpack.c.bf16 %v29_v12, %v28_v11  ;;  %v111_v15 = vld [vmem:[%s383_s3] sm:$0xff]  ;;  %v112_v16 = vld [vmem:[%s383_s3 + $0x8] sm:$0xff]  ;;  %s202_s18 = sshll.u32 %s298_s17, 4  ;;  %s203_s18 = int_to_ptr.vmem [resolvable:$true] %s202_s18 }
   0x8   :  { %257 = vmatpush3.bf16.msra.mxu0 %v256_v7  ;;  %v265_v17 = vpack.c.bf16 %v112_v16, %v111_v15  ;;  %v210_v18 = vld [vmem:[%s382_s2] ss:$0 sm:$0xff]  ;;  %s271_s3 = scalar_lea.vmem %s203_s18, 32  ;;  %p276_p1 = scmp.lt.s32.totalorder %s203_s18, %s203_s18 }
   0x9   :  { %258 = vmatprep.subr.bf16.mxu0 %v295_v3  ;;  %v212_v22 = vld [vmem:[%s384_s4] ss:$0 sm:$0xff]  ;;  %p272_p0 = scmp.ne.s32.totalorder %s203_s18, %s271_s3  ;;  %p277_p2 = scmp.lt.s32.totalorder %s271_s3, %s271_s3 }
   0xa   :  { %266 = vmatpush3.bf16.msra.mxu1 %v265_v17 }
   0xb   :  { %p278_p3 = por %p277_p2, %p276_p1 }
   0xc   :  { %260 = vmatpush3.bf16.msra.mxu0 %v259_v10 }
   0xd   :  { %261 = vmatprep.subr.bf16.mxu0 %v295_v3  ;;  %p279_p4 = pnand %p278_p3, %p272_p0 }
  0x10   :  { %263 = vmatpush3.bf16.msra.mxu0 %v262_v13 }
  0x13   :  { %243 = vmatmul.mubr.msk.f32.vlgmr.msra.gmra.mrb[0].mxu0 %vm37_vm1, %v21_v14 }
  0xe6   :  { %v107_v19 = vpop.f32.mrb[0].mxu0 }
  0xe7   :  { %v108_v20 = vadd.f32 %v210_v18, %v107_v19  ;;  %v244_v21 = vpop.f32.mrb[1].mxu0 }
  0xe9   :  { %250 = vmatmul.mubr.msk.f32.vlgmr.msra.gmra.mrb[0].mxu1 %vm120_vm2, %v108_v20 }
 0x1bc   :  { %v190_v23 = vpop.f32.mrb[0].mxu1 }
 0x1bd   :  { %v191_v24 = vadd.f32 %v212_v22, %v190_v23  ;;  %v251_v25 = vpop.f32.mrb[1].mxu1 }
 0x1bf   :  { %195 = vst.msk [vmem:[#allocation2] sm:$0x3] %vm194_vm3, %v191_v24 }
 0x1c0   :  { %282 = shalt.err (!%p279_p4)
}
 0x1c1   :  { %s283_s20 = scalar_lea.hbm %s385_s5, 32 }
 0x1c2   :  { %p284_p5 = scmp.ne.s32.totalorder %s385_s5, %s283_s20  ;;  %p287_p6 = scmp.lt.u32.totalorder %s283_s20, %s385_s5 }
 0x1c4   :  { %p289_p7 = pnand %p287_p6, %p284_p5 }
 0x1c6   :  { %292 = shalt.err (!%p289_p7)
}
 0x1c7   :  { %205 = dma.vmem_to_hbm [thread:$0]  %s203_s18, 32, %s385_s5, [#allocation3]  }
 0x1c8   :  { %293 = dma.done.wait [#allocation3], 32  }
 0x1c9   :  { %294 = vsyncadd [#allocation3], 4294967264 }
 0x1ca   :  { %209 = vsyncpa [#allocation3], 1 }

// kernel: gpn_forward.2
= control target key start
LH: loop header
LB: loop body
LE: loop exit
PB: predicated region body
PF: predicated region fallthrough
CT: control target
= control target key end

     0   :  { %s1461_s11 = smov 0   ;;  %s1463_s12 = smov 0   ;;  %s1603_s0 = inlined_call_operand.vmem [shape: f32[2,2,3,8,8], index: 0, kind: input, shape index: {}]   ;;  %s1604_s1 = inlined_call_operand.vmem [shape: f32[2,2,3,8,32], index: 1, kind: input, shape index: {}]   ;;  %s1605_s2 = inlined_call_operand.vmem [shape: f32[2,2,3,8], index: 2, kind: input, shape index: {}]   ;;  %s1606_s3 = inlined_call_operand.vmem [shape: f32[64,16], index: 3, kind: input, shape index: {}]   ;;  %s1607_s4 = inlined_call_operand.vmem [shape: f32[1,16], index: 4, kind: input, shape index: {}]   ;;  %s1608_s5 = inlined_call_operand.vmem [shape: f32[1,16], index: 5, kind: input, shape index: {}]   ;;  %s1609_s6 = inlined_call_operand.<no memory space> [shape: f32[1,1], index: 6, kind: input, shape index: {}]   ;;  %s1610_s7 = inlined_call_operand.vmem [shape: f32[2,2,3,64], index: 7, kind: output, shape index: {0}]   ;;  %s1611_s8 = inlined_call_operand.vmem [shape: f32[2,2,3,1], index: 8, kind: output, shape index: {1}]   ;;  %s1612_s9 = inlined_call_operand.vmem [shape: f32[2,2,1,1], index: 9, kind: output, shape index: {2}]  }
   0x1   :  { %v15_v0 = vstv %s1609_s6  ;;  %s1465_s13 = smov 0   ;;  %s1467_s14 = smov 0  }
   0x2   :  { %16 = vst [vmem:[#allocation2] sm:$0x1] %v15_v0  ;;  %s1469_s15 = smov 0  }
   0x3 LB: > { %1614 = sst [smem:[#allocation3_spill]] %s1398_s14  ;;  %s31_s6 = sadd.s32 1, %s1394_s13  ;;  %s1402_s15 = sphi %s1469_s15, %s22_s15   ;;  %s1398_s14 = sphi %s1467_s14, %s1619_s14   ;;  %s1394_s13 = sphi %s1465_s13, %s1621_s13   ;;  %s1390_s12 = sphi %s1463_s12, %s1617_s12   ;;  %s1386_s11 = sphi %s1461_s11, %s1620_s11  }
   0x4   : > { %s34_s16 = sadd.s32 1, %s1398_s14  ;;  %p32_p0 = scmp.ge.s32.totalorder %s31_s6, 2 }
   0x5   : > { %p1218_p1 = scmp.ge.s32.totalorder %s1402_s15, 1  ;;  %p349_p2 = scmp.lt.s32.totalorder %s1402_s15, 5 }
   0x6   : > { %s1623_s6 = smov (%p32_p0, %s31_s6), 0  ;;  %s1625_s16 = smov (!%p32_p0, %s34_s16), %s1398_s14 }
   0x7   : > { %1615 = sst [smem:[#allocation4_spill]] %s1623_s6  ;;  %p350_p3 = pnand %p1218_p1, %p349_p2 }
   0x8   : > { %p36_p4 = scmp.ge.s32.totalorder %s1625_s16, 2  ;;  %p424_p5 = scmp.lt.s32.totalorder (!%p350_p3), %s1386_s11, 1  ;;  %v1404_v1 = vmov (!%p350_p3), 0.0   ;;  %vm1405_vm0 = vmmov (!%p350_p3), 0   ;;  %vm722_vm1 = vcmask (!%p350_p3), 59392   ;;  %vm479_vm2 = vcmask (!%p350_p3), 64512  }
   0x9   : > { %353 = sbr.rel (%p350_p3) target bundleno = 883 (0x373), region = 48  ;;  %p426_p6 = scmp.lt.s32.totalorder (!%p350_p3), %s1390_s12, 1  ;;  %1255 = vmatprep.subr.mxu0 (!%p350_p3), %v1404_v1  ;;  %1260 = vmatprep.subr.mxu1 (!%p350_p3), %v1404_v1  ;;  %v780_v10 = vld [vmem:[%s1606_s3] sm:$0xff] (!%p350_p3)  ;;  %v781_v11 = vld [vmem:[%s1606_s3 + $0x8] sm:$0xff] (!%p350_p3)  ;;  %v1406_v13 = vmov (!%p350_p3), 0.0|0.0   ;;  %v782_v16 = vld [vmem:[%s1606_s3 + $0x10] sm:$0xff] (!%p350_p3) }
   0xa   : > { %s1627_s16 = smov (%p36_p4, %s1625_s16), 0  ;;  %1257 = vmatprep.mubr.msk.f32.mxu0 (!%p350_p3), %vm1405_vm0, %v1404_v1  ;;  %1262 = vmatprep.mubr.msk.f32.mxu1 (!%p350_p3), %vm1405_vm0, %v1404_v1  ;;  %v1299_v12 = vpack.c.bf16 (!%p350_p3), %v781_v11, %v780_v10  ;;  %v784_v14 = vld [vmem:[%s1606_s3 + $0x20] sm:$0xff] (!%p350_p3)  ;;  %v785_v15 = vld [vmem:[%s1606_s3 + $0x28] sm:$0xff] (!%p350_p3)  ;;  %v783_v18 = vld [vmem:[%s1606_s3 + $0x18] sm:$0xff] (!%p350_p3)  ;;  %vm699_vm3 = vcmask (!%p350_p3), 261120   ;;  %vm761_vm4 = vcmask (!%p350_p3), 1041409  }
   0xb   : > { %1616 = sst [smem:[#allocation5_spill]] %s1627_s16  ;;  %v1293_v17 = vpack.c.bf16 (!%p350_p3), %v785_v15, %v784_v14  ;;  %v1302_v19 = vpack.c.bf16 (!%p350_p3), %v783_v18, %v782_v16  ;;  %v786_v20 = vld [vmem:[%s1606_s3 + $0x30] sm:$0xff] (!%p350_p3)  ;;  %v787_v21 = vld [vmem:[%s1606_s3 + $0x38] sm:$0xff] (!%p350_p3)  ;;  %vm763_vm5 = vcmask (!%p350_p3), 1042434   ;;  %vm766_vm6 = vcmask (!%p350_p3), 256000   ;;  %p969_p7 = scmp.eq.s32.totalorder (!%p350_p3), %s1390_s12, 0 }
   0xc   : > { %v1296_v22 = vpack.c.bf16 (!%p350_p3), %v787_v21, %v786_v20  ;;  %vm949_vm7 = vcmask (!%p350_p3), 124928   ;;  %vm967_vm8 = vcmask (!%p350_p3), 2048   ;;  %vm778_vm9 = vcmask (!%p350_p3), 518400  }
   0xd   : > { %vm996_vm10 = vcmask (!%p350_p3), 0  }
  0x10   : > { %s1629_s11 = smov (!%p424_p5, %s1386_s11), 1 }
  0x11   : > { %s1499_s17 = scalar_select %p426_p6, %s1390_s12, 1 }
  0x12   : > { %s1306_s18 = smul.u32 3, %s1629_s11  ;;  %s1221_s19 = sshll.u32 %s1629_s11, 1 }
  0x13   : > { %s1307_s20 = smul.u32 6, %s1499_s17  ;;  %s447_s21 = sadd.s32 %s1221_s19, %s1499_s17 }
  0x14   : > { %s1304_s22 = smul.u32 3, %s1499_s17  ;;  %s1222_s23 = sshll.u32 %s447_s21, 2 }
  0x15   : > { %s439_s24 = sadd.s32 %s1307_s20, %s1306_s18  ;;  %s1305_s25 = smul.u32 6, %s1629_s11 }
  0x16   : > { %s1220_s26 = sshll.u32 %s439_s24, 3  ;;  %s449_s29 = scalar_lea.vmem %s1605_s2, %s1222_s23 }
  0x17   : > { %s441_s16 = scalar_lea.vmem %s1604_s1, %s1220_s26  ;;  %s430_s6 = sadd.s32 %s1305_s25, %s1304_s22  ;;  %v721_v2 = vld [vmem:[%s449_s29] sm:$0x7] }
  0x18   : > { %v476_v3 = vld [vmem:[%s441_s16] sm:$0xff]  ;;  %v477_v4 = vld [vmem:[%s441_s16 + $0x8] sm:$0xff]  ;;  %s1219_s14 = sshll.u32 %s430_s6, 3  ;;  %v723_v5 = vsel %vm722_vm1, %v721_v2, 0.0  ;;  %v478_v6 = vld [vmem:[%s441_s16 + $0x10] sm:$0xff]  ;;  %s1407_s12 = smov 32  }
  0x19   : > { %1256 = vmatpush3.msra.mxu0 %v476_v3  ;;  %1261 = vmatpush3.msra.mxu1 %v477_v4  ;;  %s432_s20 = scalar_lea.vmem %s1603_s0, %s1219_s14 }
  0x1a   : > { %v473_v7 = vld [vmem:[%s432_s20] sm:$0xff]  ;;  %v474_v8 = vld [vmem:[%s432_s20 + $0x8] sm:$0xff]  ;;  %1265 = vmatprep.subr.mxu0 %v1404_v1  ;;  %724 = vadd.xlane.f32.xlu0 %v723_v5  ;;  %v475_v9 = vld [vmem:[%s432_s20 + $0x10] sm:$0xff]  ;;  %s1223_s20 = sshll.u32 %s1499_s17, 1 }
  0x1b   : > { %1258 = vmatmul.mubr.msk.f32.vlgmr.msra.gmra.mrb[0].mxu0 %vm479_vm2, %v473_v7  ;;  %1263 = vmatmul.mubr.msk.f32.vlgmr.msra.gmra.mrb[0].mxu1 %vm479_vm2, %v474_v8  ;;  %s1554_s14 = sadd.s32 %s1223_s20, %s1629_s11 }
  0x1c   : > { %1266 = vmatpush3.msra.mxu0 %v478_v6  ;;  %1267 = vmatprep.mubr.msk.f32.mxu0 %vm1405_vm0, %v1404_v1  ;;  %s1224_s17 = sshll.u32 %s1554_s14, 2  ;;  %s472_s18 = scalar_lea.vmem %s1612_s9, %s1554_s14 }
  0x1d   : > { %1278 = vmatprep.mubr.msk.f32.mxu1 %vm1405_vm0, %v1404_v1  ;;  %1298 = vmatprep.subr.bf16.mxu0 %v1406_v13  ;;  %s1563_s16 = scalar_lea.vmem %s1610_s7, %s1224_s17  ;;  %s465_s27 = scalar_lea.vmem %s1611_s8, %s1224_s17 }
  0x1e   : > { %1292 = vmatprep.subr.bf16.mxu1 %v1406_v13  ;;  %s970_s28 = scalar_select %p969_p7, 1.0, 0.0 }
  0x1f   : > { %1268 = vmatmul.mubr.msk.f32.vlgmr.msra.gmra.mrb[2].mxu0 %vm479_vm2, %v475_v9  ;;  %1294 = vmatpush3.bf16.msra.mxu1 %v1293_v17 }
  0x20   : > { %1289 = vmatprep.mubr.msk.f32.mxu0 %vm1405_vm0, %v1404_v1  ;;  %1300 = vmatpush3.bf16.msra.mxu0 %v1299_v12  ;;  %s980_s29 = ssub.f32 1.0, %s970_s28 }
  0x21   : > { %1301 = vmatprep.subr.bf16.mxu0 %v1406_v13  ;;  %1295 = vmatprep.subr.bf16.mxu1 %v1406_v13 }
  0x23   : > { %1297 = vmatpush3.bf16.msra.mxu1 %v1296_v22 }
  0x24   : > { %1303 = vmatpush3.bf16.msra.mxu0 %v1302_v19 }
  0xa7   : > { %v725_v23 = vpop.xlane.xlu0 %724 }
  0xa8   : > { %v726_v24 = vmax.f32 %v725_v23, 1.0 }
  0xaa   : > { %1354 = vrcp.f32 %v726_v24  ;;  %v1233_v24 = vld [vmem:[%s1607_s4] ss:$0 sm:$0xff] }
  0xb4   : > { %v1355_v45 = vpop.eup %1354 }
  0xb5   : > { %v750_v56 = vrot.slane %v1355_v45, 1  ;;  %v751_v11 = vrot.slane %v1355_v45, 2 }
  0xee   : > { %v549_v25 = vpop.f32.mrb[0].mxu0  ;;  %v622_v26 = vpop.f32.mrb[0].mxu1 }
  0xef   : > { %v700_v27 = vsel %vm699_vm3, %v549_v25, -inf  ;;  %v728_v28 = vsel %vm699_vm3, %v549_v25, 0.0  ;;  %v707_v29 = vsel %vm699_vm3, %v622_v26, -inf  ;;  %v735_v30 = vsel %vm699_vm3, %v622_v26, 0.0  ;;  %v1259_v31 = vpop.f32.mrb[1].mxu0  ;;  %v1264_v32 = vpop.f32.mrb[1].mxu1 }
  0xf0   : > { %v701_v33 = vrot.slane %v700_v27, 4  ;;  %v729_v34 = vrot.slane %v728_v28, 4  ;;  %v708_v35 = vrot.slane %v707_v29, 4  ;;  %v736_v36 = vrot.slane %v735_v30, 4  ;;  %v1235_v32 = vld [vmem:[#allocation2] ss:$0 sm:$0xff] }
  0xf2   : > { %v702_v37 = vmax.f32 %v700_v27, %v701_v33  ;;  %v730_v38 = vadd.f32 %v729_v34, %v728_v28  ;;  %v709_v39 = vmax.f32 %v707_v29, %v708_v35  ;;  %v737_v40 = vadd.f32 %v736_v36, %v735_v30  ;;  %v695_v41 = vpop.f32.mrb[2].mxu0  ;;  %v1234_v28 = vld [vmem:[%s1608_s5] ss:$0 sm:$0xff] }
  0xf3   : > { %v714_v42 = vsel %vm699_vm3, %v695_v41, -inf  ;;  %v742_v43 = vsel %vm699_vm3, %v695_v41, 0.0  ;;  %v1269_v44 = vpop.f32.mrb[3].mxu0 }
  0xf4   : > { %v703_v46 = vrot.slane %v702_v37, 2  ;;  %v731_v47 = vrot.slane %v730_v38, 2  ;;  %v710_v48 = vrot.slane %v709_v39, 2  ;;  %v738_v49 = vrot.slane %v737_v40, 2 }
  0xf5   : > { %v715_v50 = vrot.slane %v714_v42, 4  ;;  %v743_v51 = vrot.slane %v742_v43, 4 }
  0xf6   : > { %v704_v52 = vmax.f32 %v702_v37, %v703_v46  ;;  %v732_v53 = vadd.f32 %v731_v47, %v730_v38  ;;  %v711_v54 = vmax.f32 %v709_v39, %v710_v48  ;;  %v739_v55 = vadd.f32 %v738_v49, %v737_v40 }
  0xf7   : > { %v716_v57 = vmax.f32 %v714_v42, %v715_v50  ;;  %v744_v58 = vadd.f32 %v743_v51, %v742_v43  ;;  %v981_v46 = vstv %s980_s29 }
  0xf8   : > { %v705_v59 = vrot.slane %v704_v52, 1  ;;  %v733_v60 = vrot.slane %v732_v53, 1  ;;  %v712_v61 = vrot.slane %v711_v54, 1  ;;  %v740_v62 = vrot.slane %v739_v55, 1 }
  0xf9   : > { %v717_v63 = vrot.slane %v716_v57, 2  ;;  %v745_v0 = vrot.slane %v744_v58, 2 }
  0xfa   : > { %v706_v1 = vmax.f32 %v704_v52, %v705_v59  ;;  %v734_v2 = vadd.f32 %v733_v60, %v732_v53  ;;  %v713_v3 = vmax.f32 %v711_v54, %v712_v61  ;;  %v741_v4 = vadd.f32 %v740_v62, %v739_v55 }
  0xfb   : > { %v718_v5 = vmax.f32 %v716_v57, %v717_v63  ;;  %v746_v6 = vadd.f32 %v745_v0, %v744_v58 }
  0xfc   : > { %v756_v7 = vmul.f32 %v750_v56, %v741_v4  ;;  %v762_v8 = vsel %vm761_vm4, %v713_v3, %v706_v1  ;;  %v755_v12 = vmul.f32 %v1355_v45, %v734_v2  ;;  %v978_v45 = vstv %s970_s28 }
  0xfd   : > { %v719_v9 = vrot.slane %v718_v5, 1  ;;  %v747_v10 = vrot.slane %v746_v6, 1 }
  0xfe   : > { %v771_v13 = vrot.slane %v756_v7, 7 }
  0xff   : > { %v720_v14 = vmax.f32 %v718_v5, %v719_v9  ;;  %v748_v15 = vadd.f32 %v747_v10, %v746_v6 }
 0x100   : > { %v772_v16 = vsel %vm761_vm4, %v771_v13, %v755_v12 }
 0x101   : > { %v757_v17 = vmul.f32 %v751_v11, %v748_v15  ;;  %v764_v18 = vsel %vm763_vm5, %v720_v14, %v762_v8 }
 0x102   : > { %1290 = vmatmul.mubr.msk.f32.vlgmr.msra.gmra.mrb[4].mxu0 %vm699_vm3, %v764_v18  ;;  %767 = vst.msk [vmem:[%s1563_s16] sm:$0x7] %vm766_vm6, %v764_v18 }
 0x103   : > { %v773_v19 = vrot.slane %v757_v17, 6 }
 0x105   : > { %v774_v20 = vsel %vm763_vm5, %v773_v19, %v772_v16 }
 0x106   : > { %1279 = vmatmul.mubr.msk.f32.vlgmr.msra.gmra.mrb[2].mxu1 %vm699_vm3, %v774_v20 }
 0x1d5   : > { %v928_v21 = vpop.f32.mrb[4].mxu0 }
 0x1d6   : > { %v1291_v22 = vpop.f32.mrb[5].mxu0 }
 0x1d9   : > { %v856_v23 = vpop.f32.mrb[2].mxu1 }
 0x1da   : > { %v929_v25 = vadd.f32 %v928_v21, %v856_v23  ;;  %v1280_v26 = vpop.f32.mrb[3].mxu1 }
 0x1dc   : > { %v939_v27 = vadd.f32 %v1233_v24, %v929_v25 }
 0x1de   : > { %v940_v29 = vmax.f32 %v939_v27, 0.0 }
 0x1e0   : > { %v948_v30 = vmul.f32 %v1234_v28, %v940_v29 }
 0x1e2   : > { %v950_v31 = vsel %vm949_vm7, %v948_v30, 0.0 }
 0x1e3   : > { %951 = vadd.xlane.f32.xlu0 %v950_v31 }
 0x270   : > { %v952_v33 = vpop.xlane.xlu0 %951 }
 0x271   : > { %v960_v34 = vadd.f32 %v1235_v32, %v952_v33 }
 0x273   : > { %v1236_v35 = vmul.f32 -1.442695, %v960_v34 }
 0x275   : > { %1356 = vpow2.f32 %v1236_v35 }
 0x27f   : > { %v1357_v36 = vpop.eup %1356 }
 0x280   : > { %v964_v37 = vadd.f32 1.0, %v1357_v36 }
 0x282   : > { %1358 = vrcp.f32 %v964_v37 }
 0x28c   : > { %v1359_v38 = vpop.eup %1358 }
 0x28d   : > { %1360 = vlog2.f32 %v1359_v38  ;;  %v974_v39 = vsub.f32 1.0, %v1359_v38  ;;  %968 = vst.msk [vmem:[%s465_s27] sm:$0x7] %vm967_vm8, %v1359_v38 }
 0x28f   : > { %1362 = vlog2.f32 %v974_v39 }
 0x297   : > { %v1361_v40 = vpop.eup %1360 }
 0x298   : > { %v972_v41 = vmul.f32 0.6931472, %v1361_v40 }
 0x299   : > { %v1363_v42 = vpop.eup %1362 }
 0x29a   : > { %v973_v43 = vmax.f32 %v972_v41, -100.0  ;;  %v976_v44 = vmul.f32 0.6931472, %v1363_v42 }
 0x29c   : > { %v977_v47 = vmax.f32 %v976_v44, -100.0  ;;  %v979_v48 = vmul.f32 %v978_v45, %v973_v43 }
 0x29e   : > { %v982_v49 = vmul.f32 %v981_v46, %v977_v47 }
 0x2a0   : > { %v983_v50 = vadd.f32 %v982_v49, %v979_v48 }
 0x2a2   : > { %v984_v51 = vsub.f32 0.0, %v983_v50 }
 0x2a4   : > { %v985_v52 = vsel %vm967_vm8, %v984_v51, 0.0 }
 0x2a5   : > { %986 = vadd.xlane.f32.xlu1 %v985_v52 }
 0x2b6   : > { %775 = vrot.lane.b32.xlu1 %v774_v20, %s1407_s12 }
 0x332   : > { %v987_v53 = vpop.xlane.xlu1 %986 }
 0x333   : > { %v988_v54 = vrot.slane %v987_v53, 4 }
 0x335   : > { %v989_v55 = vadd.f32 %v988_v54, %v987_v53 }
 0x336   : > { %v776_v56 = vpop.permute.xlu1 %775 }
 0x337   : > { %v990_v57 = vrot.slane %v989_v55, 2  ;;  %779 = vst.msk [vmem:[%s1563_s16] sm:$0x7] %vm778_vm9, %v776_v56 }
 0x339   : > { %v991_v58 = vadd.f32 %v990_v57, %v989_v55 }
 0x33b   : > { %v992_v59 = vrot.slane %v991_v58, 1 }
 0x33d   : > { %v993_v60 = vadd.f32 %v992_v59, %v991_v58 }
 0x33f   : > { %1308 = vpush %v993_v60 }
 0x370   : > { %s1309_s19 = spop %1308 }
 0x371   : > { %v995_v61 = vstv %s1309_s19 }
 0x372   : > { %997 = vst.msk [vmem:[%s472_s18] sm:$0x1] %vm996_vm10, %v995_v61 }
 0x373 PF: > { %s22_s15 = sadd.s32 1, %s1402_s15   ;;  %s1617_s12 = sld [smem:[#allocation3_spill]] }
 0x374   : > { %p19_p8 = scmp.ge.s32.totalorder %s22_s15, 6   ;;  %s1618_s20 = sld [smem:[#allocation4_spill]] }
 0x375   : > { %s1619_s14 = sld [smem:[#allocation5_spill]]  ;;  %s1620_s11 = smov %s1394_s13 }
 0x376   :  { %21 = sbr.rel (!%p19_p8) target bundleno = 3 (0x3), region = 108 }
 0x37a   : > { %s1621_s13 = smov %s1618_s20 }

</bundles_post_ra>
